<compile_context>
chip_gen: v5e
topology: v5e:2x2
jax: 0.10.0
libtpu: 0.0.40
codegen_flags: <defaults>
</compile_context>

<pallas_src>
import functools

import jax
import jax.numpy as jnp
from jax import lax
from jax.experimental import pallas as pl
from jax.experimental.pallas import tpu as pltpu

INPUT_DIM = 16
HIDDEN_DIM = 32
LANE = 128


def _sigmoid_1eup(x):
    # sigmoid(x) == 0.5 * (tanh(x/2) + 1): a single EUP push (tanh) plus VALU
    # work (VALU slots have slack), instead of exp + reciprocal (2 EUP pushes).
    return 0.5 * (jnp.tanh(0.5 * x) + 1.0)


def _nl_kernel(x_ref, w_igo_ref, b_igo_ref, w2_ref, out_ref):
    # x_ref:     (TM, 16)  row-major tile of flattened input rows
    # w_igo_ref: (96, 16)  LSTM input weights with the dead f-gate rows dropped
    # b_igo_ref: (96, 1)   b_ih + b_hh for the i/g/o gates
    # w2_ref:    (16, 32)  linear_2 weight (out_features, in_features)
    # out_ref:   (TM, 16)  row-major output tile (no wrapper transpose pass)
    x = x_ref[...]

    # gates[g, m] = sum_d w_igo[g, d] * x[m, d]  -> (96, TM); gate rows map to
    # sublanes, batch rows to lanes, so all elementwise/EUP work below runs on
    # full-width (32, TM) lane-dense slabs.
    gates = lax.dot_general(
        w_igo_ref[...], x,
        dimension_numbers=(((1,), (1,)), ((), ())),
        preferred_element_type=jnp.float32,
    )
    # (96,1) sublane bias, lane-broadcast (tiny; chase only if bundles show it).
    gates = gates + b_igo_ref[...]

    i_g = _sigmoid_1eup(gates[0 * HIDDEN_DIM:1 * HIDDEN_DIM, :])
    g_g = jnp.tanh(gates[1 * HIDDEN_DIM:2 * HIDDEN_DIM, :])
    o_g = _sigmoid_1eup(gates[2 * HIDDEN_DIM:3 * HIDDEN_DIM, :])

    c1 = i_g * g_g                       # f_gate * c_0 == 0 (dropped upstream)
    act = jnp.tanh(o_g * jnp.tanh(c1))   # LSTM output (seq_len == 1) + self.act1

    # y = w2 @ act : (16, 32) @ (32, TM) -> (16, TM); transpose in-kernel and
    # store row-major. The XLU transpose + 16-lane masked stores ride slots
    # with slack while the kernel is HBM/EUP-bound, and save the extra full
    # HBM read+write pass a wrapper-side transpose would cost.
    y = jnp.dot(w2_ref[...], act, preferred_element_type=jnp.float32)
    out_ref[...] = y.T.astype(out_ref.dtype)


def _round_up(x, m):
    return (x + m - 1) // m * m


def _chip_defaults():
    """Per-TPU-generation (tile_m, vmem_limit_bytes, split_for_megacore)."""
    kind = ""
    try:
        kind = jax.devices()[0].device_kind.lower()
    except Exception:
        pass
    if "v7" in kind:
        # 3.2 TB/s HBM -> ~1 MiB/step; only 64 MiB physical VMEM -> cap limit.
        return 8192, 48 * 1024 * 1024, True
    if "v6" in kind:
        return 8192, 64 * 1024 * 1024, False
    if "v5" in kind:
        return 4096, 64 * 1024 * 1024, False
    return 8192, 64 * 1024 * 1024, True


@functools.partial(
    jax.jit,
    static_argnames=("tile_m", "vmem_limit_bytes", "split_for_megacore"))
def _nl_forward_impl(data, params, *, tile_m, vmem_limit_bytes,
                     split_for_megacore):
    B, N, D = data.shape
    assert D == INPUT_DIM
    M = B * N
    x = data.reshape(M, INPUT_DIM)

    # Rows map to MXU/VPU lanes in the kernel, so tiles are 128-aligned. Only
    # tiny inputs (M < 128) are padded; larger M uses a ragged last grid step
    # (Pallas masks the OOB output writes; garbage input rows are row-isolated
    # through the per-row math and discarded), avoiding pad/slice HBM passes.
    if M < LANE:
        x = jnp.pad(x, ((0, LANE - M), (0, 0)))
        M_eff = LANE
    else:
        M_eff = M

    tm = min(_round_up(tile_m, LANE), (M_eff // LANE) * LANE)
    if split_for_megacore and M_eff >= 2 * LANE:
        # Keep >= 2 grid steps so the "parallel" axis feeds both TensorCores.
        tm = min(tm, _round_up(pl.cdiv(M_eff, 2), LANE))
    grid = (pl.cdiv(M_eff, tm),)

    # Drop the dead forget gate: keep PyTorch gate rows [i, g, o].
    w_ih = params["w_ih"]                                        # (128, 16)
    b = params["b_ih"] + params["b_hh"]                          # (128,)
    w_igo = jnp.concatenate(
        [w_ih[:HIDDEN_DIM], w_ih[2 * HIDDEN_DIM:]], axis=0)      # (96, 16)
    b_igo = jnp.concatenate(
        [b[:HIDDEN_DIM], b[2 * HIDDEN_DIM:]], axis=0)[:, None]   # (96, 1)
    w2 = params["w2"]                                            # (16, 32)

    cost = pl.CostEstimate(
        flops=2 * M_eff * (3 * HIDDEN_DIM * INPUT_DIM + INPUT_DIM * HIDDEN_DIM),
        transcendentals=5 * HIDDEN_DIM * M_eff,
        bytes_accessed=2 * M_eff * INPUT_DIM * 4
        + (3 * HIDDEN_DIM * (INPUT_DIM + 1) + INPUT_DIM * HIDDEN_DIM) * 4,
    )

    out = pl.pallas_call(
        _nl_kernel,
        out_shape=jax.ShapeDtypeStruct((M_eff, INPUT_DIM), jnp.float32),
        grid_spec=pltpu.PrefetchScalarGridSpec(
            num_scalar_prefetch=0,
            grid=grid,
            in_specs=[
                pl.BlockSpec((tm, INPUT_DIM), lambda i: (i, 0)),
                pl.BlockSpec((3 * HIDDEN_DIM, INPUT_DIM), lambda i: (0, 0)),
                pl.BlockSpec((3 * HIDDEN_DIM, 1), lambda i: (0, 0)),
                pl.BlockSpec((INPUT_DIM, HIDDEN_DIM), lambda i: (0, 0)),
            ],
            out_specs=pl.BlockSpec((tm, INPUT_DIM), lambda i: (i, 0)),
        ),
        compiler_params=pltpu.CompilerParams(
            dimension_semantics=("parallel",),
            vmem_limit_bytes=vmem_limit_bytes),
        cost_estimate=cost,
    )(x, w_igo, b_igo, w2)

    if M_eff != M:
        out = out[:M]
    return out.reshape(B, N, INPUT_DIM)


def nl_forward(data, params, *, tile_m=None, vmem_limit_bytes=None):
    """data: (B, N, 16) float32 -> (B, N, 16) float32 (matches NL.forward)."""
    tm_default, vmem_default, split = _chip_defaults()
    return _nl_forward_impl(
        data, params,
        tile_m=int(tile_m or tm_default),
        vmem_limit_bytes=int(vmem_limit_bytes or vmem_default),
        split_for_megacore=split)


def init_params(key):
    # Shapes mirror nn.LSTM(16, 32, batch_first=True) + nn.Linear(32, 16, bias=False).
    k1, k2, k3, k4, k5 = jax.random.split(key, 5)
    scale = 1.0 / jnp.sqrt(HIDDEN_DIM)
    return {
        "w_ih": jax.random.uniform(k1, (4 * HIDDEN_DIM, INPUT_DIM), jnp.float32, -scale, scale),
        "w_hh": jax.random.uniform(k2, (4 * HIDDEN_DIM, HIDDEN_DIM), jnp.float32, -scale, scale),  # unused: h_0 = 0
        "b_ih": jax.random.uniform(k3, (4 * HIDDEN_DIM,), jnp.float32, -scale, scale),
        "b_hh": jax.random.uniform(k4, (4 * HIDDEN_DIM,), jnp.float32, -scale, scale),
        "w2": jax.random.uniform(k5, (INPUT_DIM, HIDDEN_DIM), jnp.float32, -scale, scale),
    }


def _reference(data, params):
    # Pure-JAX reference of the PyTorch forward (seq_len = 1, zero initial state).
    B, N, _ = data.shape
    x = data.reshape(B * N, INPUT_DIM)
    gates = x @ params["w_ih"].T + params["b_ih"] + params["b_hh"]
    i_g, f_g, g_g, o_g = jnp.split(gates, 4, axis=-1)
    c1 = jax.nn.sigmoid(i_g) * jnp.tanh(g_g)
    h1 = jax.nn.sigmoid(o_g) * jnp.tanh(c1)
    y = jnp.tanh(h1) @ params["w2"].T
    return y.reshape(B, N, INPUT_DIM)


if __name__ == "__main__":
    key = jax.random.PRNGKey(0)
    k_data, k_params, k_data2 = jax.random.split(key, 3)

    B, N = 2, 8
    data = jax.random.normal(k_data, (B, N, INPUT_DIM), dtype=jnp.float32)
    params = init_params(k_params)

    out = jax.block_until_ready(nl_forward(data, params))
    ref = _reference(data, params)
    assert out.shape == (B, N, INPUT_DIM)
    assert jnp.allclose(out, ref, atol=1e-5, rtol=1e-5)

    # Ragged / multi-tile path (M = 210 -> tm = 128, grid = 2, last block
    # extends past the array and is masked on writeback).
    data2 = jax.random.normal(k_data2, (3, 70, INPUT_DIM), dtype=jnp.float32)
    out2 = jax.block_until_ready(nl_forward(data2, params))
    ref2 = _reference(data2, params)
    assert out2.shape == (3, 70, INPUT_DIM)
    assert jnp.allclose(out2, ref2, atol=1e-5, rtol=1e-5)

    print("KERNEL_OK")
</pallas_src>

<mosaic_0001>
module attributes {stable_mosaic.version = 11 : i64} {
  func.func @_nl_kernel(%arg0: i32, %arg1: memref<128x16xf32, #tpu.memory_space<vmem>>, %arg2: memref<96x16xf32, #tpu.memory_space<vmem>>, %arg3: memref<96x1xf32, #tpu.memory_space<vmem>>, %arg4: memref<16x32xf32, #tpu.memory_space<vmem>>, %arg5: memref<128x16xf32, #tpu.memory_space<vmem>>) attributes {dimension_semantics = [#tpu.dimension_semantics<parallel>], iteration_bounds = array<i64: 1>, scalar_prefetch = 0 : i64, scratch_operands = 0 : i64, tpu.core_type = #tpu.core_type<tc>, window_params = [{transform_indices = @transform_0, window_bounds = array<i64: 128, 16>}, {pipeline_mode = #tpu.pipeline_mode<synchronous>, transform_indices = @transform_1, window_bounds = array<i64: 96, 16>}, {pipeline_mode = #tpu.pipeline_mode<synchronous>, transform_indices = @transform_2, window_bounds = array<i64: 96, 1>}, {pipeline_mode = #tpu.pipeline_mode<synchronous>, transform_indices = @transform_3, window_bounds = array<i64: 16, 32>}, {transform_indices = @transform_4, window_bounds = array<i64: 128, 16>}]} {
    %c0 = arith.constant 0 : index
    %c0_0 = arith.constant 0 : index
    %0 = vector.load %arg1[%c0, %c0_0] : memref<128x16xf32, #tpu.memory_space<vmem>>, vector<128x16xf32>
    %c0_1 = arith.constant 0 : index
    %c0_2 = arith.constant 0 : index
    %1 = vector.load %arg2[%c0_1, %c0_2] : memref<96x16xf32, #tpu.memory_space<vmem>>, vector<96x16xf32>
    %cst = arith.constant dense<0.000000e+00> : vector<96x128xf32>
    %2 = tpu.matmul %1, %0, %cst {dimension_numbers = #tpu.dot_dimension_numbers<[1], [1], [0], [0], [0, 0, 1, 0], [], []>} : vector<96x16xf32>, vector<128x16xf32>, vector<96x128xf32> -> vector<96x128xf32>
    %c0_3 = arith.constant 0 : index
    %c0_4 = arith.constant 0 : index
    %3 = vector.load %arg3[%c0_3, %c0_4] : memref<96x1xf32, #tpu.memory_space<vmem>>, vector<96x1xf32>
    %4 = vector.broadcast %3 : vector<96x1xf32> to vector<96x128xf32>
    %5 = arith.addf %2, %4 : vector<96x128xf32>
    %6 = vector.extract_strided_slice %5 {offsets = [0, 0], sizes = [32, 128], strides = [1, 1]} : vector<96x128xf32> to vector<32x128xf32>
    %cst_5 = arith.constant 5.000000e-01 : f32
    %7 = vector.broadcast %cst_5 : f32 to vector<32x128xf32>
    %8 = arith.mulf %7, %6 : vector<32x128xf32>
    %9 = math.tanh %8 : vector<32x128xf32>
    %cst_6 = arith.constant 1.000000e+00 : f32
    %10 = vector.broadcast %cst_6 : f32 to vector<32x128xf32>
    %11 = arith.addf %9, %10 : vector<32x128xf32>
    %cst_7 = arith.constant 5.000000e-01 : f32
    %12 = vector.broadcast %cst_7 : f32 to vector<32x128xf32>
    %13 = arith.mulf %12, %11 : vector<32x128xf32>
    %14 = vector.extract_strided_slice %5 {offsets = [32, 0], sizes = [32, 128], strides = [1, 1]} : vector<96x128xf32> to vector<32x128xf32>
    %15 = math.tanh %14 : vector<32x128xf32>
    %16 = vector.extract_strided_slice %5 {offsets = [64, 0], sizes = [32, 128], strides = [1, 1]} : vector<96x128xf32> to vector<32x128xf32>
    %cst_8 = arith.constant 5.000000e-01 : f32
    %17 = vector.broadcast %cst_8 : f32 to vector<32x128xf32>
    %18 = arith.mulf %17, %16 : vector<32x128xf32>
    %19 = math.tanh %18 : vector<32x128xf32>
    %cst_9 = arith.constant 1.000000e+00 : f32
    %20 = vector.broadcast %cst_9 : f32 to vector<32x128xf32>
    %21 = arith.addf %19, %20 : vector<32x128xf32>
    %cst_10 = arith.constant 5.000000e-01 : f32
    %22 = vector.broadcast %cst_10 : f32 to vector<32x128xf32>
    %23 = arith.mulf %22, %21 : vector<32x128xf32>
    %24 = arith.mulf %13, %15 : vector<32x128xf32>
    %25 = math.tanh %24 : vector<32x128xf32>
    %26 = arith.mulf %23, %25 : vector<32x128xf32>
    %27 = math.tanh %26 : vector<32x128xf32>
    %c0_11 = arith.constant 0 : index
    %c0_12 = arith.constant 0 : index
    %28 = vector.load %arg4[%c0_11, %c0_12] : memref<16x32xf32, #tpu.memory_space<vmem>>, vector<16x32xf32>
    %cst_13 = arith.constant dense<0.000000e+00> : vector<16x128xf32>
    %29 = tpu.matmul %28, %27, %cst_13 {dimension_numbers = #tpu.dot_dimension_numbers<[1], [0], [0], [1], [0, 0, 1, 1], [], []>} : vector<16x32xf32>, vector<32x128xf32>, vector<16x128xf32> -> vector<16x128xf32>
    %30 = tpu.transpose %29, [1, 0] : vector<16x128xf32> -> vector<128x16xf32>
    %c0_14 = arith.constant 0 : index
    %c0_15 = arith.constant 0 : index
    %31 = vector.load %arg5[%c0_14, %c0_15] : memref<128x16xf32, #tpu.memory_space<vmem>>, vector<128x16xf32>
    tpu.vector_store %arg5[%c0_14, %c0_15], %30 {strides = array<i32>} : memref<128x16xf32, #tpu.memory_space<vmem>>, vector<128x16xf32>,
    return
  }
  func.func @transform_0(%arg0: i32) -> (i32, i32) {
    %c0_i32 = arith.constant 0 : i32
    %c0_i32_0 = arith.constant 0 : i32
    return %arg0, %c0_i32 : i32, i32
  }
  func.func @transform_1(%arg0: i32) -> (i32, i32) {
    %c0_i32 = arith.constant 0 : i32
    %c0_i32_0 = arith.constant 0 : i32
    %c0_i32_1 = arith.constant 0 : i32
    return %c0_i32, %c0_i32_0 : i32, i32
  }
  func.func @transform_2(%arg0: i32) -> (i32, i32) {
    %c0_i32 = arith.constant 0 : i32
    %c0_i32_0 = arith.constant 0 : i32
    %c0_i32_1 = arith.constant 0 : i32
    return %c0_i32, %c0_i32_0 : i32, i32
  }
  func.func @transform_3(%arg0: i32) -> (i32, i32) {
    %c0_i32 = arith.constant 0 : i32
    %c0_i32_0 = arith.constant 0 : i32
    %c0_i32_1 = arith.constant 0 : i32
    return %c0_i32, %c0_i32_0 : i32, i32
  }
  func.func @transform_4(%arg0: i32) -> (i32, i32) {
    %c0_i32 = arith.constant 0 : i32
    %c0_i32_0 = arith.constant 0 : i32
    return %arg0, %c0_i32 : i32, i32
  }
}

</mosaic_0001>

<bundles_post_ra>
// kernel: _nl_forward_impl.1
= control target key start
LH: loop header
LB: loop body
LE: loop exit
PB: predicated region body
PF: predicated region fallthrough
CT: control target
= control target key end

     0   :  { %vm117_vm0 = vcmask 130048   ;;  %v514_v8 = vmov 0   ;;  %vm309_vm1 = vcmask 261120   ;;  %s806_s0 = inlined_call_operand.vmem [shape: f32[128,16], index: 0, kind: input, shape index: {}]   ;;  %s807_s2 = inlined_call_operand.vmem [shape: f32[96,1], index: 2, kind: input, shape index: {}]   ;;  %s808_s1 = inlined_call_operand.vmem [shape: f32[96,16], index: 1, kind: input, shape index: {}]   ;;  %s809_s3 = inlined_call_operand.vmem [shape: f32[16,32], index: 3, kind: input, shape index: {}]   ;;  %s810_s4 = inlined_call_operand.vmem [shape: f32[128,16], index: 4, kind: output, shape index: {}]  }
   0x1   :  { %v32_v0 = vld [vmem:[%s806_s0 + $0x78] sm:$0xff]  ;;  %v31_v1 = vld [vmem:[%s806_s0 + $0x70] sm:$0xff]  ;;  %v30_v2 = vld [vmem:[%s806_s0 + $0x68] sm:$0xff]  ;;  %471 = vset.pattern.permute.xlu0 %v514_v8  ;;  %472 = vset.pattern.permute.xlu1 %v514_v8 }
   0x2   :  { %391 = vmatpush.xpose.msk.msra.mxu0 %vm117_vm0, %v32_v0  ;;  %423 = vmatpush.xpose.msk.msra.mxu3 %vm117_vm0, %v32_v0  ;;  %v29_v3 = vld [vmem:[%s806_s0 + $0x60] sm:$0xff]  ;;  %v28_v4 = vld [vmem:[%s806_s0 + $0x58] sm:$0xff]  ;;  %v27_v5 = vld [vmem:[%s806_s0 + $0x50] sm:$0xff] }
   0x3   :  { %421 = vmatpush.xpose.msk.msra.mxu1 %vm117_vm0, %v32_v0  ;;  %422 = vmatpush.xpose.msk.msra.mxu2 %vm117_vm0, %v32_v0  ;;  %v48_v6 = vld [vmem:[%s807_s2 + $0x18] sm:$0xff]  ;;  %v26_v7 = vld [vmem:[%s806_s0 + $0x48] sm:$0xff]  ;;  %v25_v9 = vld [vmem:[%s806_s0 + $0x40] sm:$0xff] }
   0x4   :  { %74 = vperm.xlu0 %471, %v48_v6   ;;  %473 = vset.pattern.permute.xlu2 %v514_v8  ;;  %v24_v10 = vld [vmem:[%s806_s0 + $0x38] sm:$0xff]  ;;  %v46_v11 = vld [vmem:[%s807_s2 + $0x8] sm:$0xff]  ;;  %v47_v12 = vld [vmem:[%s807_s2 + $0x10] sm:$0xff] }
   0x5   :  { %64 = vperm.xlu1 %472, %v46_v11   ;;  %v23_v13 = vld [vmem:[%s806_s0 + $0x30] sm:$0xff]  ;;  %v22_v14 = vld [vmem:[%s806_s0 + $0x28] sm:$0xff]  ;;  %v45_v15 = vld [vmem:[%s807_s2] sm:$0xff] }
   0x6   :  { %392 = vmatpush.xpose.msk.msra.mxu0 %vm117_vm0, %v31_v1  ;;  %426 = vmatpush.xpose.msk.msra.mxu3 %vm117_vm0, %v31_v1  ;;  %v56_v16 = vld [vmem:[%s807_s2 + $0x58] sm:$0xff]  ;;  %v21_v17 = vld [vmem:[%s806_s0 + $0x20] sm:$0xff]  ;;  %v50_v19 = vld [vmem:[%s807_s2 + $0x28] sm:$0xff] }
   0x7   :  { %424 = vmatpush.xpose.msk.msra.mxu1 %vm117_vm0, %v31_v1  ;;  %425 = vmatpush.xpose.msk.msra.mxu2 %vm117_vm0, %v31_v1  ;;  %v20_v18 = vld [vmem:[%s806_s0 + $0x18] sm:$0xff]  ;;  %v49_v20 = vld [vmem:[%s807_s2 + $0x20] sm:$0xff]  ;;  %v19_v22 = vld [vmem:[%s806_s0 + $0x10] sm:$0xff] }
   0x8   :  { %v52_v21 = vld [vmem:[%s807_s2 + $0x38] sm:$0xff]  ;;  %v18_v23 = vld [vmem:[%s806_s0 + $0x8] sm:$0xff]  ;;  %v51_v25 = vld [vmem:[%s807_s2 + $0x30] sm:$0xff] }
   0x9   :  { %94 = vperm.xlu2 %473, %v52_v21   ;;  %v54_v24 = vld [vmem:[%s807_s2 + $0x48] sm:$0xff]  ;;  %v17_v26 = vld [vmem:[%s806_s0] sm:$0xff]  ;;  %v39_v30 = vld [vmem:[%s808_s1 + $0x30] sm:$0xff] }
   0xa   :  { %393 = vmatpush.xpose.msk.msra.mxu0 %vm117_vm0, %v30_v2  ;;  %429 = vmatpush.xpose.msk.msra.mxu3 %vm117_vm0, %v30_v2  ;;  %v33_v27 = vld [vmem:[%s808_s1] sm:$0xff]  ;;  %v55_v31 = vld [vmem:[%s807_s2 + $0x50] sm:$0xff]  ;;  %v34_v32 = vld [vmem:[%s808_s1 + $0x8] sm:$0xff] }
   0xb   :  { %427 = vmatpush.xpose.msk.msra.mxu1 %vm117_vm0, %v30_v2  ;;  %428 = vmatpush.xpose.msk.msra.mxu2 %vm117_vm0, %v30_v2  ;;  %v41_v28 = vld [vmem:[%s808_s1 + $0x40] sm:$0xff]  ;;  %v42_v33 = vld [vmem:[%s808_s1 + $0x48] sm:$0xff]  ;;  %v40_v35 = vld [vmem:[%s808_s1 + $0x38] sm:$0xff] }
   0xc   :  { %69 = vperm.xlu0 %471, %v47_v12   ;;  %v37_v29 = vld [vmem:[%s808_s1 + $0x20] sm:$0xff]  ;;  %v38_v34 = vld [vmem:[%s808_s1 + $0x28] sm:$0xff]  ;;  %v35_v37 = vld [vmem:[%s808_s1 + $0x10] sm:$0xff] }
   0xd   :  { %59 = vperm.xlu1 %472, %v45_v15   ;;  %v53_v36 = vld [vmem:[%s807_s2 + $0x40] sm:$0xff]  ;;  %v43_v38 = vld [vmem:[%s808_s1 + $0x50] sm:$0xff]  ;;  %v36_v39 = vld [vmem:[%s808_s1 + $0x18] sm:$0xff] }
   0xe   :  { %394 = vmatpush.xpose.msk.msra.mxu0 %vm117_vm0, %v29_v3  ;;  %432 = vmatpush.xpose.msk.msra.mxu3 %vm117_vm0, %v29_v3  ;;  %v44_v40 = vld [vmem:[%s808_s1 + $0x58] sm:$0xff] }
   0xf   :  { %430 = vmatpush.xpose.msk.msra.mxu1 %vm117_vm0, %v29_v3  ;;  %431 = vmatpush.xpose.msk.msra.mxu2 %vm117_vm0, %v29_v3 }
  0x11   :  { %89 = vperm.xlu2 %473, %v51_v25  }
  0x12   :  { %395 = vmatpush.xpose.msk.msra.mxu0 %vm117_vm0, %v28_v4  ;;  %435 = vmatpush.xpose.msk.msra.mxu3 %vm117_vm0, %v28_v4 }
  0x13   :  { %433 = vmatpush.xpose.msk.msra.mxu1 %vm117_vm0, %v28_v4  ;;  %434 = vmatpush.xpose.msk.msra.mxu2 %vm117_vm0, %v28_v4 }
  0x14   :  { %114 = vperm.xlu0 %471, %v56_v16  }
  0x15   :  { %84 = vperm.xlu1 %472, %v50_v19  }
  0x16   :  { %396 = vmatpush.xpose.msk.msra.mxu0 %vm117_vm0, %v27_v5  ;;  %438 = vmatpush.xpose.msk.msra.mxu3 %vm117_vm0, %v27_v5 }
  0x17   :  { %436 = vmatpush.xpose.msk.msra.mxu1 %vm117_vm0, %v27_v5  ;;  %437 = vmatpush.xpose.msk.msra.mxu2 %vm117_vm0, %v27_v5 }
  0x19   :  { %109 = vperm.xlu2 %473, %v55_v31  }
  0x1a   :  { %397 = vmatpush.xpose.msk.msra.mxu0 %vm117_vm0, %v26_v7  ;;  %441 = vmatpush.xpose.msk.msra.mxu3 %vm117_vm0, %v26_v7 }
  0x1b   :  { %439 = vmatpush.xpose.msk.msra.mxu1 %vm117_vm0, %v26_v7  ;;  %440 = vmatpush.xpose.msk.msra.mxu2 %vm117_vm0, %v26_v7 }
  0x1c   :  { %79 = vperm.xlu0 %471, %v49_v20  }
  0x1d   :  { %104 = vperm.xlu1 %472, %v54_v24  }
  0x1e   :  { %398 = vmatpush.xpose.msk.msra.mxu0 %vm117_vm0, %v25_v9  ;;  %444 = vmatpush.xpose.msk.msra.mxu3 %vm117_vm0, %v25_v9 }
  0x1f   :  { %442 = vmatpush.xpose.msk.msra.mxu1 %vm117_vm0, %v25_v9  ;;  %443 = vmatpush.xpose.msk.msra.mxu2 %vm117_vm0, %v25_v9 }
  0x21   :  { %99 = vperm.xlu2 %473, %v53_v36  }
  0x22   :  { %399 = vmatpush.xpose.msk.msra.mxu0 %vm117_vm0, %v24_v10  ;;  %447 = vmatpush.xpose.msk.msra.mxu3 %vm117_vm0, %v24_v10 }
  0x23   :  { %445 = vmatpush.xpose.msk.msra.mxu1 %vm117_vm0, %v24_v10  ;;  %446 = vmatpush.xpose.msk.msra.mxu2 %vm117_vm0, %v24_v10 }
  0x26   :  { %400 = vmatpush.xpose.msk.msra.mxu0 %vm117_vm0, %v23_v13  ;;  %450 = vmatpush.xpose.msk.msra.mxu3 %vm117_vm0, %v23_v13 }
  0x27   :  { %448 = vmatpush.xpose.msk.msra.mxu1 %vm117_vm0, %v23_v13  ;;  %449 = vmatpush.xpose.msk.msra.mxu2 %vm117_vm0, %v23_v13 }
  0x2a   :  { %401 = vmatpush.xpose.msk.msra.mxu0 %vm117_vm0, %v22_v14  ;;  %453 = vmatpush.xpose.msk.msra.mxu3 %vm117_vm0, %v22_v14 }
  0x2b   :  { %451 = vmatpush.xpose.msk.msra.mxu1 %vm117_vm0, %v22_v14  ;;  %452 = vmatpush.xpose.msk.msra.mxu2 %vm117_vm0, %v22_v14 }
  0x2e   :  { %402 = vmatpush.xpose.msk.msra.mxu0 %vm117_vm0, %v21_v17  ;;  %456 = vmatpush.xpose.msk.msra.mxu3 %vm117_vm0, %v21_v17 }
  0x2f   :  { %454 = vmatpush.xpose.msk.msra.mxu1 %vm117_vm0, %v21_v17  ;;  %455 = vmatpush.xpose.msk.msra.mxu2 %vm117_vm0, %v21_v17 }
  0x32   :  { %403 = vmatpush.xpose.msk.msra.mxu0 %vm117_vm0, %v20_v18  ;;  %459 = vmatpush.xpose.msk.msra.mxu3 %vm117_vm0, %v20_v18 }
  0x33   :  { %457 = vmatpush.xpose.msk.msra.mxu1 %vm117_vm0, %v20_v18  ;;  %458 = vmatpush.xpose.msk.msra.mxu2 %vm117_vm0, %v20_v18 }
  0x36   :  { %404 = vmatpush.xpose.msk.msra.mxu0 %vm117_vm0, %v19_v22  ;;  %462 = vmatpush.xpose.msk.msra.mxu3 %vm117_vm0, %v19_v22 }
  0x37   :  { %460 = vmatpush.xpose.msk.msra.mxu1 %vm117_vm0, %v19_v22  ;;  %461 = vmatpush.xpose.msk.msra.mxu2 %vm117_vm0, %v19_v22 }
  0x3a   :  { %405 = vmatpush.xpose.msk.msra.mxu0 %vm117_vm0, %v18_v23  ;;  %465 = vmatpush.xpose.msk.msra.mxu3 %vm117_vm0, %v18_v23 }
  0x3b   :  { %463 = vmatpush.xpose.msk.msra.mxu1 %vm117_vm0, %v18_v23  ;;  %464 = vmatpush.xpose.msk.msra.mxu2 %vm117_vm0, %v18_v23 }
  0x3e   :  { %406 = vmatpush.xpose.msk.msra.mxu0 %vm117_vm0, %v17_v26  ;;  %468 = vmatpush.xpose.msk.msra.mxu3 %vm117_vm0, %v17_v26 }
  0x3f   :  { %466 = vmatpush.xpose.msk.msra.mxu1 %vm117_vm0, %v17_v26  ;;  %467 = vmatpush.xpose.msk.msra.mxu2 %vm117_vm0, %v17_v26 }
  0x41   :  { %407 = vmatmul.msk.f32.vlgmr.msra.gmra.mxu0 %vm117_vm0, %v33_v27  ;;  %415 = vmatmul.msk.f32.vlgmr.msra.gmra.mxu3 %vm117_vm0, %v41_v28 }
  0x42   :  { %411 = vmatmul.msk.f32.vlgmr.msra.gmra.mxu1 %vm117_vm0, %v37_v29  ;;  %413 = vmatmul.msk.f32.vlgmr.msra.gmra.mxu2 %vm117_vm0, %v39_v30 }
  0x49   :  { %408 = vmatmul.msk.f32.gmra.mxu0 %vm117_vm0, %v34_v32  ;;  %416 = vmatmul.msk.f32.gmra.mxu3 %vm117_vm0, %v42_v33 }
  0x4a   :  { %412 = vmatmul.msk.f32.gmra.mxu1 %vm117_vm0, %v38_v34  ;;  %414 = vmatmul.msk.f32.gmra.mxu2 %vm117_vm0, %v40_v35 }
  0x51   :  { %409 = vmatmul.msk.f32.gmra.mxu0 %vm117_vm0, %v35_v37  ;;  %417 = vmatmul.msk.f32.gmra.mxu3 %vm117_vm0, %v43_v38 }
  0x59   :  { %410 = vmatmul.msk.f32.gmra.mxu0 %vm117_vm0, %v36_v39  ;;  %418 = vmatmul.msk.f32.gmra.mxu3 %vm117_vm0, %v44_v40 }
  0x63   :  { %v95_v41 = vpop.permute.xlu2 %94 }
  0x6b   :  { %v90_v45 = vpop.permute.xlu2 %89 }
  0x73   :  { %v110_v50 = vpop.permute.xlu2 %109 }
  0x76   :  { %v75_v42 = vpop.permute.xlu0 %74 }
  0x77   :  { %v65_v43 = vpop.permute.xlu1 %64 }
  0x7b   :  { %v100_v63 = vpop.permute.xlu2 %99 }
  0x7e   :  { %v70_v46 = vpop.permute.xlu0 %69 }
  0x7f   :  { %v60_v47 = vpop.permute.xlu1 %59 }
  0x86   :  { %v115_v53 = vpop.permute.xlu0 %114 }
  0x87   :  { %v85_v54 = vpop.permute.xlu1 %84 }
  0x8e   :  { %v80_v2 = vpop.permute.xlu0 %79 }
  0x8f   :  { %v105_v6 = vpop.permute.xlu1 %104 }
  0xbe   :  { %v219_v44 = vpop.f32.mrf.mxu0 }
  0xbf   :  { %v231_v51 = vpop.f32.mrf.mxu1  ;;  %v220_v56 = vadd.f32 %v219_v44, %v60_v47 }
  0xc0   :  { %v232_v13 = vadd.f32 %v231_v51, %v80_v2  ;;  %v308_v2 = vld [vmem:[%s809_s3 + $0x8] sm:$0xff] }
  0xc1   :  { %v255_v61 = vmul.f32 0.5, %v220_v56 }
  0xc4   :  { %v243_v48 = vpop.f32.mrf.mxu3 }
  0xc5   :  { %v237_v58 = vpop.f32.mrf.mxu2  ;;  %v244_v4 = vadd.f32 %v243_v48, %v100_v63 }
  0xc6   :  { %v222_v49 = vpop.f32.mrf.mxu0  ;;  %v238_v3 = vadd.f32 %v237_v58, %v90_v45 }
  0xc7   :  { %v223_v52 = vadd.f32 %v222_v49, %v65_v43  ;;  %v234_v0 = vpop.f32.mrf.mxu1  ;;  %v275_v16 = vmul.f32 0.5, %v244_v4 }
  0xc8   :  { %v235_v5 = vadd.f32 %v234_v0, %v85_v54  ;;  %v307_v0 = vld [vmem:[%s809_s3] sm:$0xff] }
  0xc9   :  { %v256_v57 = vmul.f32 0.5, %v223_v52 }
  0xcb   :  { %474 = vtanh.f32 %v256_v57 }
  0xcc   :  { %v246_v55 = vpop.f32.mrf.mxu3 }
  0xcd   :  { %v240_v10 = vpop.f32.mrf.mxu2  ;;  %v247_v14 = vadd.f32 %v246_v55, %v105_v6 }
  0xce   :  { %v225_v59 = vpop.f32.mrf.mxu0  ;;  %v241_v20 = vadd.f32 %v240_v10, %v95_v41 }
  0xcf   :  { %v226_v60 = vadd.f32 %v225_v59, %v70_v46  ;;  %v276_v23 = vmul.f32 0.5, %v247_v14 }
  0xd1   :  { %v257_v62 = vmul.f32 0.5, %v226_v60  ;;  %v475_v9 = vpop.eup %474 }
  0xd2   :  { %v264_v19 = vadd.f32 1.0, %v475_v9 }
  0xd3   :  { %476 = vtanh.f32 %v257_v62 }
  0xd4   :  { %v249_v1 = vpop.f32.mrf.mxu3  ;;  %478 = vtanh.f32 %v255_v61  ;;  %v268_v28 = vmul.f32 0.5, %v264_v19 }
  0xd5   :  { %v250_v11 = vadd.f32 %v249_v1, %v110_v50  ;;  %480 = vtanh.f32 %v238_v3 }
  0xd6   :  { %v228_v7 = vpop.f32.mrf.mxu0  ;;  %482 = vtanh.f32 %v235_v5 }
  0xd7   :  { %v229_v8 = vadd.f32 %v228_v7, %v75_v42  ;;  %v277_v21 = vmul.f32 0.5, %v250_v11 }
  0xd9   :  { %v477_v12 = vpop.eup %476  ;;  %v258_v15 = vmul.f32 0.5, %v229_v8 }
  0xda   :  { %v265_v17 = vadd.f32 1.0, %v477_v12  ;;  %v479_v18 = vpop.eup %478 }
  0xdb   :  { %484 = vtanh.f32 %v258_v15  ;;  %v263_v25 = vadd.f32 1.0, %v479_v18  ;;  %v481_v27 = vpop.eup %480 }
  0xdc   :  { %v252_v22 = vpop.f32.mrf.mxu3  ;;  %486 = vtanh.f32 %v232_v13  ;;  %v269_v26 = vmul.f32 0.5, %v265_v17  ;;  %v483_v30 = vpop.eup %482 }
  0xdd   :  { %v253_v24 = vadd.f32 %v252_v22, %v115_v53  ;;  %488 = vtanh.f32 %v275_v16  ;;  %v267_v32 = vmul.f32 0.5, %v263_v25  ;;  %v292_v36 = vmul.f32 %v483_v30, %v268_v28 }
  0xde   :  { %490 = vtanh.f32 %v241_v20  ;;  %v293_v33 = vmul.f32 %v481_v27, %v269_v26 }
  0xdf   :  { %v278_v29 = vmul.f32 0.5, %v253_v24  ;;  %492 = vtanh.f32 %v277_v21 }
  0xe0   :  { %494 = vtanh.f32 %v276_v23 }
  0xe1   :  { %v485_v31 = vpop.eup %484  ;;  %496 = vtanh.f32 %v278_v29 }
  0xe2   :  { %v266_v34 = vadd.f32 1.0, %v485_v31  ;;  %v487_v35 = vpop.eup %486  ;;  %498 = vtanh.f32 %v293_v33 }
  0xe3   :  { %v489_v37 = vpop.eup %488  ;;  %v291_v41 = vmul.f32 %v487_v35, %v267_v32  ;;  %500 = vtanh.f32 %v292_v36 }
  0xe4   :  { %v270_v38 = vmul.f32 0.5, %v266_v34  ;;  %v491_v39 = vpop.eup %490  ;;  %v283_v47 = vadd.f32 1.0, %v489_v37 }
  0xe5   :  { %v493_v40 = vpop.eup %492 }
  0xe6   :  { %v294_v42 = vmul.f32 %v491_v39, %v270_v38  ;;  %v495_v43 = vpop.eup %494  ;;  %v285_v45 = vadd.f32 1.0, %v493_v40  ;;  %v287_v54 = vmul.f32 0.5, %v283_v47 }
  0xe7   :  { %v497_v44 = vpop.eup %496  ;;  %v284_v48 = vadd.f32 1.0, %v495_v43 }
  0xe8   :  { %502 = vtanh.f32 %v294_v42  ;;  %v286_v46 = vadd.f32 1.0, %v497_v44  ;;  %v499_v49 = vpop.eup %498  ;;  %v289_v51 = vmul.f32 0.5, %v285_v45 }
  0xe9   :  { %504 = vtanh.f32 %v291_v41  ;;  %v501_v50 = vpop.eup %500  ;;  %v288_v55 = vmul.f32 0.5, %v284_v48 }
  0xea   :  { %v290_v52 = vmul.f32 0.5, %v286_v46  ;;  %v301_v56 = vmul.f32 %v499_v49, %v289_v51 }
  0xeb   :  { %v300_v59 = vmul.f32 %v501_v50, %v288_v55 }
  0xee   :  { %v503_v53 = vpop.eup %502 }
  0xef   :  { %v302_v57 = vmul.f32 %v503_v53, %v290_v52  ;;  %v505_v58 = vpop.eup %504 }
  0xf0   :  { %v299_v60 = vmul.f32 %v505_v58, %v287_v54 }
  0xf1   :  { %506 = vtanh.f32 %v302_v57 }
  0xf2   :  { %508 = vtanh.f32 %v301_v56 }
  0xf3   :  { %510 = vtanh.f32 %v300_v59 }
  0xf4   :  { %512 = vtanh.f32 %v299_v60 }
  0xf7   :  { %v507_v61 = vpop.eup %506 }
  0xf8   :  { %328 = vmatpush.msrb.mxu1 %v507_v61  ;;  %v509_v62 = vpop.eup %508 }
  0xf9   :  { %v511_v63 = vpop.eup %510 }
  0xfa   :  { %329 = vmatpush.msrb.mxu1 %v509_v62  ;;  %v513_v1 = vpop.eup %512 }
  0xfc   :  { %330 = vmatpush.msrb.mxu1 %v511_v63 }
  0xfe   :  { %331 = vmatpush.msrb.mxu1 %v513_v1 }
  0xff   :  { %419 = vmatmul.msk.f32.vlgmr.msrb.gmra.mxu1 %vm309_vm1, %v307_v0 }
 0x107   :  { %420 = vmatmul.msk.f32.gmra.mxu1 %vm309_vm1, %v308_v2 }
 0x17c   :  { %v333_v3 = vpop.f32.mrf.mxu1 }
 0x17d   :  { %339 = vxpose.xlu0.b32.start [1/2] (short) %v333_v3, 128 }
 0x184   :  { %v336_v4 = vpop.f32.mrf.mxu1 }
 0x185   :  { %340 = vxpose.xlu0.b32.end [2/2] (short) %v336_v4, 128 }
 0x221   :  { %v355_v5 = vpop.trf.xlu0 }
 0x222   :  { %371 = vst.msk [vmem:[%s810_s4] sm:$0xff] %vm117_vm0, %v355_v5 }
 0x229   :  { %v356_v6 = vpop.trf.xlu0 }
 0x22a   :  { %372 = vst.msk [vmem:[%s810_s4 + $0x8] sm:$0xff] %vm117_vm0, %v356_v6 }
 0x231   :  { %v357_v7 = vpop.trf.xlu0 }
 0x232   :  { %373 = vst.msk [vmem:[%s810_s4 + $0x10] sm:$0xff] %vm117_vm0, %v357_v7 }
 0x239   :  { %v358_v8 = vpop.trf.xlu0 }
 0x23a   :  { %374 = vst.msk [vmem:[%s810_s4 + $0x18] sm:$0xff] %vm117_vm0, %v358_v8 }
 0x241   :  { %v359_v9 = vpop.trf.xlu0 }
 0x242   :  { %375 = vst.msk [vmem:[%s810_s4 + $0x20] sm:$0xff] %vm117_vm0, %v359_v9 }
 0x249   :  { %v360_v10 = vpop.trf.xlu0 }
 0x24a   :  { %376 = vst.msk [vmem:[%s810_s4 + $0x28] sm:$0xff] %vm117_vm0, %v360_v10 }
 0x251   :  { %v361_v11 = vpop.trf.xlu0 }
 0x252   :  { %377 = vst.msk [vmem:[%s810_s4 + $0x30] sm:$0xff] %vm117_vm0, %v361_v11 }
 0x259   :  { %v362_v12 = vpop.trf.xlu0 }
 0x25a   :  { %378 = vst.msk [vmem:[%s810_s4 + $0x38] sm:$0xff] %vm117_vm0, %v362_v12 }
 0x261   :  { %v363_v13 = vpop.trf.xlu0 }
 0x262   :  { %379 = vst.msk [vmem:[%s810_s4 + $0x40] sm:$0xff] %vm117_vm0, %v363_v13 }
 0x269   :  { %v364_v14 = vpop.trf.xlu0 }
 0x26a   :  { %380 = vst.msk [vmem:[%s810_s4 + $0x48] sm:$0xff] %vm117_vm0, %v364_v14 }
 0x271   :  { %v365_v15 = vpop.trf.xlu0 }
 0x272   :  { %381 = vst.msk [vmem:[%s810_s4 + $0x50] sm:$0xff] %vm117_vm0, %v365_v15 }
 0x279   :  { %v366_v16 = vpop.trf.xlu0 }
 0x27a   :  { %382 = vst.msk [vmem:[%s810_s4 + $0x58] sm:$0xff] %vm117_vm0, %v366_v16 }
 0x281   :  { %v367_v17 = vpop.trf.xlu0 }
 0x282   :  { %383 = vst.msk [vmem:[%s810_s4 + $0x60] sm:$0xff] %vm117_vm0, %v367_v17 }
 0x289   :  { %v368_v18 = vpop.trf.xlu0 }
 0x28a   :  { %384 = vst.msk [vmem:[%s810_s4 + $0x68] sm:$0xff] %vm117_vm0, %v368_v18 }
 0x291   :  { %v369_v19 = vpop.trf.xlu0 }
 0x292   :  { %385 = vst.msk [vmem:[%s810_s4 + $0x70] sm:$0xff] %vm117_vm0, %v369_v19 }
 0x299   :  { %v370_v20 = vpop.trf.xlu0 }
 0x29a   :  { %386 = vst.msk [vmem:[%s810_s4 + $0x78] sm:$0xff] %vm117_vm0, %v370_v20 }

</bundles_post_ra>
